<compile_context>
chip_gen: v7x
topology: tpu7x:2x2x1
jax: 0.10.0
libtpu: 0.0.40
codegen_flags: <defaults>
</compile_context>

<pallas_src>
import functools

import jax
import jax.numpy as jnp
from jax import lax
from jax.experimental import pallas as pl
from jax.experimental.pallas import tpu as pltpu

_VMEM_LIMIT = 32 * 1024 * 1024


def _cdiv(a, b):
    return -(-a // b)


def _pick_row_tile(ho, wo, row_bytes, target_rows=512, vmem_budget=6 * 1024 * 1024):
    """Output rows per grid step.

    Aims at ~target_rows rows of the implicit im2col matrix per step (amortize
    per-step overhead), keeps the double-buffered input block inside a
    conservative VMEM budget, and keeps the output block's second-to-minor dim
    a multiple of 8 (the (8,128) rule) unless it equals the full dim.
    """
    th = max(1, min(ho, target_rows // max(1, wo)))
    while th > 1 and 2 * th * row_bytes > vmem_budget:
        th //= 2
    if ho > 8:
        th = max(8, (th // 8) * 8)
    else:
        th = ho
    return th


# ---------------------------------------------------------------------------
# Pallas kernels
# ---------------------------------------------------------------------------
def _conv3x3s2_kernel(xm_ref, xe_ref, w_ref, b_ref, o_ref):
    # xm_ref: (1, 2, th, 2, Wo+1, Cin)  padded rows 2*ho .. 2*ho+2*th-1
    # xe_ref: (1, 1, 1,  2, Wo+1, Cin)  padded row  2*ho+2*th   (kh=2 of last row)
    # w_ref : (9, Cin, Cout)            HWIO weights, k = kh*3 + kw
    # b_ref : (1, Cout)                 f32 bias
    # o_ref : (1, th*Wo, Cout)
    _, _, th, _, wo1, cin = xm_ref.shape
    wo = wo1 - 1
    cout = w_ref.shape[-1]

    def tap(kh, kw):
        cp = 1 if kw == 1 else 0          # column parity of this tap
        j0 = 1 if kw == 2 else 0          # column offset (in output units)
        if kh < 2:
            t = xm_ref[0, kh, :, cp, j0:j0 + wo, :]                 # (th, wo, cin)
        else:
            bot = xe_ref[0, 0, 0, cp, j0:j0 + wo, :]                # (wo, cin)
            if th == 1:
                t = bot[None]
            else:
                top = xm_ref[0, 0, 1:th, cp, j0:j0 + wo, :]         # (th-1, wo, cin)
                t = jnp.concatenate([top, bot[None]], axis=0)       # (th, wo, cin)
        return t.reshape(th * wo, cin)

    acc = jnp.zeros((th * wo, cout), jnp.float32)
    for kh in range(3):                    # 9 accumulating MXU matmuls, f32 acc
        for kw in range(3):
            acc = acc + jnp.dot(tap(kh, kw), w_ref[kh * 3 + kw],
                                preferred_element_type=jnp.float32)
    acc = acc + b_ref[...].astype(jnp.float32)
    o_ref[0, :, :] = acc.astype(o_ref.dtype)


def _avgpool2x2_kernel(x_ref, o_ref):
    # x_ref: (1, 2, 2, th, Wo*C)   the four 2x2 taps, lane-dense
    # o_ref: (1, th, Wo*C)
    s = (x_ref[0, 0, 0, :, :].astype(jnp.float32)
         + x_ref[0, 0, 1, :, :].astype(jnp.float32)
         + x_ref[0, 1, 0, :, :].astype(jnp.float32)
         + x_ref[0, 1, 1, :, :].astype(jnp.float32))
    o_ref[0, :, :] = (s * 0.25).astype(o_ref.dtype)


# ---------------------------------------------------------------------------
# Wrappers (NCHW in, NCHW out) mirroring Downsample.forward
# ---------------------------------------------------------------------------
def _conv_path(x_nchw, params, compute_dtype):
    N, Cin, H, W = x_nchw.shape
    w = jnp.asarray(params["w"])          # (3, 3, Cin, Cout), HWIO
    b = jnp.asarray(params["b"])          # (Cout,)
    Cout = w.shape[-1]
    Ho, Wo = H // 2, W // 2               # torch: pad (0,1,0,1), k=3, s=2

    cdtype = jnp.dtype(compute_dtype) if compute_dtype is not None else x_nchw.dtype
    row_bytes = 4 * (Wo + 1) * Cin * jnp.dtype(cdtype).itemsize
    th = _pick_row_tile(Ho, Wo, row_bytes)
    T = _cdiv(Ho, th)
    Ho_pad = T * th

    # Bottom/right zero padding (>= the single row/col torch adds; extra pad
    # only feeds output rows >= Ho, which are sliced off below).
    Hp, Wp = 2 * (Ho_pad + 1), 2 * (Wo + 1)
    xp = jnp.pad(x_nchw, ((0, 0), (0, 0), (0, Hp - H), (0, Wp - W)))
    # Parity-split + NCHW -> channels-last in ONE copy:
    #   xs[n, rp, i, cp, j, c] = xp[n, c, 2*i+rp, 2*j+cp]
    xs = xp.reshape(N, Cin, Ho_pad + 1, 2, Wo + 1, 2).transpose(0, 3, 2, 5, 4, 1)
    w9 = w.reshape(9, Cin, Cout)
    b_row = b.reshape(1, Cout).astype(jnp.float32)
    if compute_dtype is not None:          # e.g. bf16 MXU operands on v6e/v7x
        xs = xs.astype(cdtype)
        w9 = w9.astype(cdtype)

    out_flat = pl.pallas_call(
        _conv3x3s2_kernel,
        out_shape=jax.ShapeDtypeStruct((N, Ho_pad * Wo, Cout), x_nchw.dtype),
        grid=(N, T),
        in_specs=[
            # rows 2*ho .. 2*ho+2*th-1 of the padded image for this row tile
            pl.BlockSpec((1, 2, th, 2, Wo + 1, Cin),
                         lambda n, t: (n, 0, t, 0, 0, 0)),
            # one extra even row (2*ho + 2*th) feeding the kh=2 taps
            pl.BlockSpec((1, 1, 1, 2, Wo + 1, Cin),
                         lambda n, t: (n, 0, (t + 1) * th, 0, 0, 0)),
            pl.BlockSpec((9, Cin, Cout), lambda n, t: (0, 0, 0)),
            pl.BlockSpec((1, Cout), lambda n, t: (0, 0)),
        ],
        out_specs=pl.BlockSpec((1, th * Wo, Cout), lambda n, t: (n, t, 0)),
        compiler_params=pltpu.CompilerParams(
            dimension_semantics=("parallel", "parallel"),
            vmem_limit_bytes=_VMEM_LIMIT),
    )(xs, xs, w9, b_row)

    out = out_flat.reshape(N, Ho_pad, Wo, Cout)[:, :Ho]
    return jnp.transpose(out, (0, 3, 1, 2))          # -> NCHW


def _pool_path(x_nchw):
    N, C, H, W = x_nchw.shape
    Ho, Wo = H // 2, W // 2
    row_bytes = 4 * Wo * C * x_nchw.dtype.itemsize
    th = _pick_row_tile(Ho, Wo, row_bytes)
    T = _cdiv(Ho, th)
    Ho_pad = T * th

    H2, W2 = 2 * Ho_pad, 2 * Wo
    xc = x_nchw
    if (H2, W2) != (H, W):                # crop odd remainder / pad row tiles
        xc = xc[:, :, :min(H, H2), :W2]
        if xc.shape[2] < H2:
            xc = jnp.pad(xc, ((0, 0), (0, 0), (0, H2 - xc.shape[2]), (0, 0)))
    # xv[n, a, b, i, j*C + c] = x[n, c, 2*i+a, 2*j+b]   (single fused copy)
    xv = (xc.reshape(N, C, Ho_pad, 2, Wo, 2)
            .transpose(0, 3, 5, 2, 4, 1)
            .reshape(N, 2, 2, Ho_pad, Wo * C))

    out_flat = pl.pallas_call(
        _avgpool2x2_kernel,
        out_shape=jax.ShapeDtypeStruct((N, Ho_pad, Wo * C), x_nchw.dtype),
        grid=(N, T),
        in_specs=[pl.BlockSpec((1, 2, 2, th, Wo * C),
                               lambda n, t: (n, 0, 0, t, 0))],
        out_specs=pl.BlockSpec((1, th, Wo * C), lambda n, t: (n, t, 0)),
        compiler_params=pltpu.CompilerParams(
            dimension_semantics=("parallel", "parallel"),
            vmem_limit_bytes=_VMEM_LIMIT),
    )(xv)

    out = out_flat.reshape(N, Ho_pad, Wo, C)[:, :Ho]
    return jnp.transpose(out, (0, 3, 1, 2))          # -> NCHW


@functools.partial(jax.jit, static_argnames=("with_conv", "compute_dtype"))
def downsample(x_nchw, params, with_conv, compute_dtype=None):
    """Forward pass of Downsample (NCHW in, NCHW out), matching torch."""
    if with_conv:
        return _conv_path(x_nchw, params, compute_dtype)
    return _pool_path(x_nchw)


# ---------------------------------------------------------------------------
# Demo / self-check
# ---------------------------------------------------------------------------
if __name__ == "__main__":
    key = jax.random.PRNGKey(0)
    kx, kw, kb = jax.random.split(key, 3)

    N, C, H, W = 2, 4, 16, 16
    x = jax.random.normal(kx, (N, C, H, W), dtype=jnp.float32)

    # Conv2d(C, C, kernel_size=3, stride=2) params, stored HWIO.
    w = jax.random.normal(kw, (3, 3, C, C), dtype=jnp.float32) * 0.1
    b = jax.random.normal(kb, (C,), dtype=jnp.float32) * 0.1
    params = {"w": w, "b": b}

    y_conv = jax.block_until_ready(downsample(x, params, with_conv=True))
    y_pool = jax.block_until_ready(downsample(x, params, with_conv=False))

    # Pure-JAX references.
    x_nhwc = jnp.transpose(x, (0, 2, 3, 1))
    xpad = jnp.pad(x_nhwc, ((0, 0), (0, 1), (0, 1), (0, 0)))
    ref_conv = lax.conv_general_dilated(
        xpad, w, window_strides=(2, 2), padding="VALID",
        dimension_numbers=("NHWC", "HWIO", "NHWC")) + b
    ref_conv = jnp.transpose(ref_conv, (0, 3, 1, 2))

    ref_pool = lax.reduce_window(
        x_nhwc, 0.0, lax.add, (1, 2, 2, 1), (1, 2, 2, 1), "VALID") / 4.0
    ref_pool = jnp.transpose(ref_pool, (0, 3, 1, 2))

    assert y_conv.shape == (N, C, H // 2, W // 2), y_conv.shape
    assert y_pool.shape == (N, C, H // 2, W // 2), y_pool.shape
    assert jnp.allclose(y_conv, ref_conv, atol=1e-4, rtol=1e-4)
    assert jnp.allclose(y_pool, ref_pool, atol=1e-6, rtol=1e-6)

    print("KERNEL_OK")
</pallas_src>

<mosaic_0001>
module attributes {stable_mosaic.version = 11 : i64} {
  func.func @_conv3x3s2_kernel(%arg0: i32, %arg1: i32, %arg2: memref<1x2x8x2x9x4xf32, #tpu.memory_space<vmem>>, %arg3: memref<1x1x1x2x9x4xf32, #tpu.memory_space<vmem>>, %arg4: memref<9x4x4xf32, #tpu.memory_space<vmem>>, %arg5: memref<1x4xf32, #tpu.memory_space<vmem>>, %arg6: memref<1x64x4xf32, #tpu.memory_space<vmem>>) attributes {dimension_semantics = [#tpu.dimension_semantics<parallel>, #tpu.dimension_semantics<parallel>], iteration_bounds = array<i64: 2, 1>, scalar_prefetch = 0 : i64, scratch_operands = 0 : i64, tpu.core_type = #tpu.core_type<tc>, window_params = [{transform_indices = @transform_0, window_bounds = array<i64: 1, 2, 8, 2, 9, 4>}, {transform_indices = @transform_1, window_bounds = array<i64: 1, 1, 1, 2, 9, 4>}, {pipeline_mode = #tpu.pipeline_mode<synchronous>, transform_indices = @transform_2, window_bounds = array<i64: 9, 4, 4>}, {pipeline_mode = #tpu.pipeline_mode<synchronous>, transform_indices = @transform_3, window_bounds = array<i64: 1, 4>}, {transform_indices = @transform_4, window_bounds = array<i64: 1, 64, 4>}]} {
    %cst = arith.constant 0.000000e+00 : f32
    %0 = vector.broadcast %cst : f32 to vector<64x4xf32>
    %c0 = arith.constant 0 : index
    %c0_0 = arith.constant 0 : index
    %c0_1 = arith.constant 0 : index
    %c0_2 = arith.constant 0 : index
    %c0_3 = arith.constant 0 : index
    %c0_4 = arith.constant 0 : index
    %1 = vector.load %arg2[%c0, %c0_0, %c0_1, %c0_2, %c0_3, %c0_4] : memref<1x2x8x2x9x4xf32, #tpu.memory_space<vmem>>, vector<1x1x8x1x8x4xf32>
    %2 = vector.shape_cast %1 : vector<1x1x8x1x8x4xf32> to vector<8x8x4xf32>
    %3 = vector.shape_cast %2 : vector<8x8x4xf32> to vector<64x4xf32>
    %c0_5 = arith.constant 0 : index
    %c0_6 = arith.constant 0 : index
    %c0_7 = arith.constant 0 : index
    %4 = vector.load %arg4[%c0_5, %c0_6, %c0_7] : memref<9x4x4xf32, #tpu.memory_space<vmem>>, vector<1x4x4xf32>
    %5 = vector.shape_cast %4 : vector<1x4x4xf32> to vector<4x4xf32>
    %cst_8 = arith.constant dense<0.000000e+00> : vector<64x4xf32>
    %6 = tpu.matmul %3, %5, %cst_8 {dimension_numbers = #tpu.dot_dimension_numbers<[1], [0], [0], [1], [0, 0, 1, 1], [], []>} : vector<64x4xf32>, vector<4x4xf32>, vector<64x4xf32> -> vector<64x4xf32>
    %7 = arith.addf %0, %6 : vector<64x4xf32>
    %c0_9 = arith.constant 0 : index
    %c0_10 = arith.constant 0 : index
    %c0_11 = arith.constant 0 : index
    %c1 = arith.constant 1 : index
    %c0_12 = arith.constant 0 : index
    %c0_13 = arith.constant 0 : index
    %8 = vector.load %arg2[%c0_9, %c0_10, %c0_11, %c1, %c0_12, %c0_13] : memref<1x2x8x2x9x4xf32, #tpu.memory_space<vmem>>, vector<1x1x8x1x8x4xf32>
    %9 = vector.shape_cast %8 : vector<1x1x8x1x8x4xf32> to vector<8x8x4xf32>
    %10 = vector.shape_cast %9 : vector<8x8x4xf32> to vector<64x4xf32>
    %c1_14 = arith.constant 1 : index
    %c0_15 = arith.constant 0 : index
    %c0_16 = arith.constant 0 : index
    %11 = vector.load %arg4[%c1_14, %c0_15, %c0_16] : memref<9x4x4xf32, #tpu.memory_space<vmem>>, vector<1x4x4xf32>
    %12 = vector.shape_cast %11 : vector<1x4x4xf32> to vector<4x4xf32>
    %cst_17 = arith.constant dense<0.000000e+00> : vector<64x4xf32>
    %13 = tpu.matmul %10, %12, %cst_17 {dimension_numbers = #tpu.dot_dimension_numbers<[1], [0], [0], [1], [0, 0, 1, 1], [], []>} : vector<64x4xf32>, vector<4x4xf32>, vector<64x4xf32> -> vector<64x4xf32>
    %14 = arith.addf %7, %13 : vector<64x4xf32>
    %c0_18 = arith.constant 0 : index
    %c0_19 = arith.constant 0 : index
    %c0_20 = arith.constant 0 : index
    %c0_21 = arith.constant 0 : index
    %c1_22 = arith.constant 1 : index
    %c0_23 = arith.constant 0 : index
    %15 = vector.load %arg2[%c0_18, %c0_19, %c0_20, %c0_21, %c1_22, %c0_23] : memref<1x2x8x2x9x4xf32, #tpu.memory_space<vmem>>, vector<1x1x8x1x8x4xf32>
    %16 = vector.shape_cast %15 : vector<1x1x8x1x8x4xf32> to vector<8x8x4xf32>
    %17 = vector.shape_cast %16 : vector<8x8x4xf32> to vector<64x4xf32>
    %c2 = arith.constant 2 : index
    %c0_24 = arith.constant 0 : index
    %c0_25 = arith.constant 0 : index
    %18 = vector.load %arg4[%c2, %c0_24, %c0_25] : memref<9x4x4xf32, #tpu.memory_space<vmem>>, vector<1x4x4xf32>
    %19 = vector.shape_cast %18 : vector<1x4x4xf32> to vector<4x4xf32>
    %cst_26 = arith.constant dense<0.000000e+00> : vector<64x4xf32>
    %20 = tpu.matmul %17, %19, %cst_26 {dimension_numbers = #tpu.dot_dimension_numbers<[1], [0], [0], [1], [0, 0, 1, 1], [], []>} : vector<64x4xf32>, vector<4x4xf32>, vector<64x4xf32> -> vector<64x4xf32>
    %21 = arith.addf %14, %20 : vector<64x4xf32>
    %c0_27 = arith.constant 0 : index
    %c1_28 = arith.constant 1 : index
    %c0_29 = arith.constant 0 : index
    %c0_30 = arith.constant 0 : index
    %c0_31 = arith.constant 0 : index
    %c0_32 = arith.constant 0 : index
    %22 = vector.load %arg2[%c0_27, %c1_28, %c0_29, %c0_30, %c0_31, %c0_32] : memref<1x2x8x2x9x4xf32, #tpu.memory_space<vmem>>, vector<1x1x8x1x8x4xf32>
    %23 = vector.shape_cast %22 : vector<1x1x8x1x8x4xf32> to vector<8x8x4xf32>
    %24 = vector.shape_cast %23 : vector<8x8x4xf32> to vector<64x4xf32>
    %c3 = arith.constant 3 : index
    %c0_33 = arith.constant 0 : index
    %c0_34 = arith.constant 0 : index
    %25 = vector.load %arg4[%c3, %c0_33, %c0_34] : memref<9x4x4xf32, #tpu.memory_space<vmem>>, vector<1x4x4xf32>
    %26 = vector.shape_cast %25 : vector<1x4x4xf32> to vector<4x4xf32>
    %cst_35 = arith.constant dense<0.000000e+00> : vector<64x4xf32>
    %27 = tpu.matmul %24, %26, %cst_35 {dimension_numbers = #tpu.dot_dimension_numbers<[1], [0], [0], [1], [0, 0, 1, 1], [], []>} : vector<64x4xf32>, vector<4x4xf32>, vector<64x4xf32> -> vector<64x4xf32>
    %28 = arith.addf %21, %27 : vector<64x4xf32>
    %c0_36 = arith.constant 0 : index
    %c1_37 = arith.constant 1 : index
    %c0_38 = arith.constant 0 : index
    %c1_39 = arith.constant 1 : index
    %c0_40 = arith.constant 0 : index
    %c0_41 = arith.constant 0 : index
    %29 = vector.load %arg2[%c0_36, %c1_37, %c0_38, %c1_39, %c0_40, %c0_41] : memref<1x2x8x2x9x4xf32, #tpu.memory_space<vmem>>, vector<1x1x8x1x8x4xf32>
    %30 = vector.shape_cast %29 : vector<1x1x8x1x8x4xf32> to vector<8x8x4xf32>
    %31 = vector.shape_cast %30 : vector<8x8x4xf32> to vector<64x4xf32>
    %c4 = arith.constant 4 : index
    %c0_42 = arith.constant 0 : index
    %c0_43 = arith.constant 0 : index
    %32 = vector.load %arg4[%c4, %c0_42, %c0_43] : memref<9x4x4xf32, #tpu.memory_space<vmem>>, vector<1x4x4xf32>
    %33 = vector.shape_cast %32 : vector<1x4x4xf32> to vector<4x4xf32>
    %cst_44 = arith.constant dense<0.000000e+00> : vector<64x4xf32>
    %34 = tpu.matmul %31, %33, %cst_44 {dimension_numbers = #tpu.dot_dimension_numbers<[1], [0], [0], [1], [0, 0, 1, 1], [], []>} : vector<64x4xf32>, vector<4x4xf32>, vector<64x4xf32> -> vector<64x4xf32>
    %35 = arith.addf %28, %34 : vector<64x4xf32>
    %c0_45 = arith.constant 0 : index
    %c1_46 = arith.constant 1 : index
    %c0_47 = arith.constant 0 : index
    %c0_48 = arith.constant 0 : index
    %c1_49 = arith.constant 1 : index
    %c0_50 = arith.constant 0 : index
    %36 = vector.load %arg2[%c0_45, %c1_46, %c0_47, %c0_48, %c1_49, %c0_50] : memref<1x2x8x2x9x4xf32, #tpu.memory_space<vmem>>, vector<1x1x8x1x8x4xf32>
    %37 = vector.shape_cast %36 : vector<1x1x8x1x8x4xf32> to vector<8x8x4xf32>
    %38 = vector.shape_cast %37 : vector<8x8x4xf32> to vector<64x4xf32>
    %c5 = arith.constant 5 : index
    %c0_51 = arith.constant 0 : index
    %c0_52 = arith.constant 0 : index
    %39 = vector.load %arg4[%c5, %c0_51, %c0_52] : memref<9x4x4xf32, #tpu.memory_space<vmem>>, vector<1x4x4xf32>
    %40 = vector.shape_cast %39 : vector<1x4x4xf32> to vector<4x4xf32>
    %cst_53 = arith.constant dense<0.000000e+00> : vector<64x4xf32>
    %41 = tpu.matmul %38, %40, %cst_53 {dimension_numbers = #tpu.dot_dimension_numbers<[1], [0], [0], [1], [0, 0, 1, 1], [], []>} : vector<64x4xf32>, vector<4x4xf32>, vector<64x4xf32> -> vector<64x4xf32>
    %42 = arith.addf %35, %41 : vector<64x4xf32>
    %c0_54 = arith.constant 0 : index
    %c0_55 = arith.constant 0 : index
    %c0_56 = arith.constant 0 : index
    %c0_57 = arith.constant 0 : index
    %c0_58 = arith.constant 0 : index
    %c0_59 = arith.constant 0 : index
    %43 = vector.load %arg3[%c0_54, %c0_55, %c0_56, %c0_57, %c0_58, %c0_59] : memref<1x1x1x2x9x4xf32, #tpu.memory_space<vmem>>, vector<1x1x1x1x8x4xf32>
    %44 = vector.shape_cast %43 : vector<1x1x1x1x8x4xf32> to vector<8x4xf32>
    %c0_60 = arith.constant 0 : index
    %c0_61 = arith.constant 0 : index
    %c1_62 = arith.constant 1 : index
    %c0_63 = arith.constant 0 : index
    %c0_64 = arith.constant 0 : index
    %c0_65 = arith.constant 0 : index
    %45 = vector.load %arg2[%c0_60, %c0_61, %c1_62, %c0_63, %c0_64, %c0_65] : memref<1x2x8x2x9x4xf32, #tpu.memory_space<vmem>>, vector<1x1x7x1x8x4xf32>
    %46 = vector.shape_cast %45 : vector<1x1x7x1x8x4xf32> to vector<7x8x4xf32>
    %47 = vector.shape_cast %44 : vector<8x4xf32> to vector<1x8x4xf32>
    %48 = tpu.concatenate %46, %47 in 0 : vector<7x8x4xf32>, vector<1x8x4xf32> -> vector<8x8x4xf32>
    %49 = vector.shape_cast %48 : vector<8x8x4xf32> to vector<64x4xf32>
    %c6 = arith.constant 6 : index
    %c0_66 = arith.constant 0 : index
    %c0_67 = arith.constant 0 : index
    %50 = vector.load %arg4[%c6, %c0_66, %c0_67] : memref<9x4x4xf32, #tpu.memory_space<vmem>>, vector<1x4x4xf32>
    %51 = vector.shape_cast %50 : vector<1x4x4xf32> to vector<4x4xf32>
    %cst_68 = arith.constant dense<0.000000e+00> : vector<64x4xf32>
    %52 = tpu.matmul %49, %51, %cst_68 {dimension_numbers = #tpu.dot_dimension_numbers<[1], [0], [0], [1], [0, 0, 1, 1], [], []>} : vector<64x4xf32>, vector<4x4xf32>, vector<64x4xf32> -> vector<64x4xf32>
    %53 = arith.addf %42, %52 : vector<64x4xf32>
    %c0_69 = arith.constant 0 : index
    %c0_70 = arith.constant 0 : index
    %c0_71 = arith.constant 0 : index
    %c1_72 = arith.constant 1 : index
    %c0_73 = arith.constant 0 : index
    %c0_74 = arith.constant 0 : index
    %54 = vector.load %arg3[%c0_69, %c0_70, %c0_71, %c1_72, %c0_73, %c0_74] : memref<1x1x1x2x9x4xf32, #tpu.memory_space<vmem>>, vector<1x1x1x1x8x4xf32>
    %55 = vector.shape_cast %54 : vector<1x1x1x1x8x4xf32> to vector<8x4xf32>
    %c0_75 = arith.constant 0 : index
    %c0_76 = arith.constant 0 : index
    %c1_77 = arith.constant 1 : index
    %c1_78 = arith.constant 1 : index
    %c0_79 = arith.constant 0 : index
    %c0_80 = arith.constant 0 : index
    %56 = vector.load %arg2[%c0_75, %c0_76, %c1_77, %c1_78, %c0_79, %c0_80] : memref<1x2x8x2x9x4xf32, #tpu.memory_space<vmem>>, vector<1x1x7x1x8x4xf32>
    %57 = vector.shape_cast %56 : vector<1x1x7x1x8x4xf32> to vector<7x8x4xf32>
    %58 = vector.shape_cast %55 : vector<8x4xf32> to vector<1x8x4xf32>
    %59 = tpu.concatenate %57, %58 in 0 : vector<7x8x4xf32>, vector<1x8x4xf32> -> vector<8x8x4xf32>
    %60 = vector.shape_cast %59 : vector<8x8x4xf32> to vector<64x4xf32>
    %c7 = arith.constant 7 : index
    %c0_81 = arith.constant 0 : index
    %c0_82 = arith.constant 0 : index
    %61 = vector.load %arg4[%c7, %c0_81, %c0_82] : memref<9x4x4xf32, #tpu.memory_space<vmem>>, vector<1x4x4xf32>
    %62 = vector.shape_cast %61 : vector<1x4x4xf32> to vector<4x4xf32>
    %cst_83 = arith.constant dense<0.000000e+00> : vector<64x4xf32>
    %63 = tpu.matmul %60, %62, %cst_83 {dimension_numbers = #tpu.dot_dimension_numbers<[1], [0], [0], [1], [0, 0, 1, 1], [], []>} : vector<64x4xf32>, vector<4x4xf32>, vector<64x4xf32> -> vector<64x4xf32>
    %64 = arith.addf %53, %63 : vector<64x4xf32>
    %c0_84 = arith.constant 0 : index
    %c0_85 = arith.constant 0 : index
    %c0_86 = arith.constant 0 : index
    %c0_87 = arith.constant 0 : index
    %c1_88 = arith.constant 1 : index
    %c0_89 = arith.constant 0 : index
    %65 = vector.load %arg3[%c0_84, %c0_85, %c0_86, %c0_87, %c1_88, %c0_89] : memref<1x1x1x2x9x4xf32, #tpu.memory_space<vmem>>, vector<1x1x1x1x8x4xf32>
    %66 = vector.shape_cast %65 : vector<1x1x1x1x8x4xf32> to vector<8x4xf32>
    %c0_90 = arith.constant 0 : index
    %c0_91 = arith.constant 0 : index
    %c1_92 = arith.constant 1 : index
    %c0_93 = arith.constant 0 : index
    %c1_94 = arith.constant 1 : index
    %c0_95 = arith.constant 0 : index
    %67 = vector.load %arg2[%c0_90, %c0_91, %c1_92, %c0_93, %c1_94, %c0_95] : memref<1x2x8x2x9x4xf32, #tpu.memory_space<vmem>>, vector<1x1x7x1x8x4xf32>
    %68 = vector.shape_cast %67 : vector<1x1x7x1x8x4xf32> to vector<7x8x4xf32>
    %69 = vector.shape_cast %66 : vector<8x4xf32> to vector<1x8x4xf32>
    %70 = tpu.concatenate %68, %69 in 0 : vector<7x8x4xf32>, vector<1x8x4xf32> -> vector<8x8x4xf32>
    %71 = vector.shape_cast %70 : vector<8x8x4xf32> to vector<64x4xf32>
    %c8 = arith.constant 8 : index
    %c0_96 = arith.constant 0 : index
    %c0_97 = arith.constant 0 : index
    %72 = vector.load %arg4[%c8, %c0_96, %c0_97] : memref<9x4x4xf32, #tpu.memory_space<vmem>>, vector<1x4x4xf32>
    %73 = vector.shape_cast %72 : vector<1x4x4xf32> to vector<4x4xf32>
    %cst_98 = arith.constant dense<0.000000e+00> : vector<64x4xf32>
    %74 = tpu.matmul %71, %73, %cst_98 {dimension_numbers = #tpu.dot_dimension_numbers<[1], [0], [0], [1], [0, 0, 1, 1], [], []>} : vector<64x4xf32>, vector<4x4xf32>, vector<64x4xf32> -> vector<64x4xf32>
    %75 = arith.addf %64, %74 : vector<64x4xf32>
    %c0_99 = arith.constant 0 : index
    %c0_100 = arith.constant 0 : index
    %76 = vector.load %arg5[%c0_99, %c0_100] : memref<1x4xf32, #tpu.memory_space<vmem>>, vector<1x4xf32>
    %77 = vector.broadcast %76 : vector<1x4xf32> to vector<64x4xf32>
    %78 = arith.addf %75, %77 : vector<64x4xf32>
    %c0_101 = arith.constant 0 : index
    %c0_102 = arith.constant 0 : index
    %c0_103 = arith.constant 0 : index
    %79 = vector.load %arg6[%c0_101, %c0_102, %c0_103] : memref<1x64x4xf32, #tpu.memory_space<vmem>>, vector<1x64x4xf32>
    %80 = vector.shape_cast %79 : vector<1x64x4xf32> to vector<64x4xf32>
    %81 = vector.shape_cast %78 : vector<64x4xf32> to vector<1x64x4xf32>
    tpu.vector_store %arg6[%c0_101, %c0_102, %c0_103], %81 {strides = array<i32>} : memref<1x64x4xf32, #tpu.memory_space<vmem>>, vector<1x64x4xf32>,
    return
  }
  func.func @transform_0(%arg0: i32, %arg1: i32) -> (i32, i32, i32, i32, i32, i32) {
    %c0_i32 = arith.constant 0 : i32
    %c0_i32_0 = arith.constant 0 : i32
    %c0_i32_1 = arith.constant 0 : i32
    %c0_i32_2 = arith.constant 0 : i32
    %c0_i32_3 = arith.constant 0 : i32
    return %arg0, %c0_i32, %arg1, %c0_i32_0, %c0_i32_1, %c0_i32_2 : i32, i32, i32, i32, i32, i32
  }
  func.func @transform_1(%arg0: i32, %arg1: i32) -> (i32, i32, i32, i32, i32, i32) {
    %c1_i32 = arith.constant 1 : i32
    %0 = arith.addi %arg1, %c1_i32 : i32
    %c8_i32 = arith.constant 8 : i32
    %1 = arith.muli %0, %c8_i32 : i32
    %c0_i32 = arith.constant 0 : i32
    %c0_i32_0 = arith.constant 0 : i32
    %c0_i32_1 = arith.constant 0 : i32
    %c0_i32_2 = arith.constant 0 : i32
    %c0_i32_3 = arith.constant 0 : i32
    return %arg0, %c0_i32, %1, %c0_i32_0, %c0_i32_1, %c0_i32_2 : i32, i32, i32, i32, i32, i32
  }
  func.func @transform_2(%arg0: i32, %arg1: i32) -> (i32, i32, i32) {
    %c0_i32 = arith.constant 0 : i32
    %c0_i32_0 = arith.constant 0 : i32
    %c0_i32_1 = arith.constant 0 : i32
    %c0_i32_2 = arith.constant 0 : i32
    return %c0_i32, %c0_i32_0, %c0_i32_1 : i32, i32, i32
  }
  func.func @transform_3(%arg0: i32, %arg1: i32) -> (i32, i32) {
    %c0_i32 = arith.constant 0 : i32
    %c0_i32_0 = arith.constant 0 : i32
    %c0_i32_1 = arith.constant 0 : i32
    return %c0_i32, %c0_i32_0 : i32, i32
  }
  func.func @transform_4(%arg0: i32, %arg1: i32) -> (i32, i32, i32) {
    %c0_i32 = arith.constant 0 : i32
    %c0_i32_0 = arith.constant 0 : i32
    return %arg0, %arg1, %c0_i32 : i32, i32, i32
  }
}

</mosaic_0001>

<bundles_post_ra>
// kernel: downsample.1
= control target key start
LH: loop header
LB: loop body
LE: loop exit
PB: predicated region body
PF: predicated region fallthrough
CT: control target
= control target key end

     0   :  { %s2773_s15 = smov 0   ;;  %s2775_s16 = smov 0   ;;  %s3215_s0 = inlined_call_operand.vmem [shape: f32[2,2,9,2,9,4], index: 0, kind: input, shape index: {}, may-alias: {0,1}]   ;;  %s3216_s1 = inlined_call_operand.vmem [shape: f32[2,2,9,2,9,4], index: 1, kind: input, shape index: {}, may-alias: {0,1}]   ;;  %s3217_s2 = inlined_call_operand.vmem [shape: f32[9,4,4], index: 2, kind: input, shape index: {}]   ;;  %s3218_s3 = inlined_call_operand.vmem [shape: f32[1,4], index: 3, kind: input, shape index: {}]   ;;  %s3219_s4 = inlined_call_operand.vmem [shape: f32[2,64,4], index: 4, kind: output, shape index: {}]  }
   0x1   :  { %s2777_s17 = smov 0   ;;  %s2779_s18 = smov 0  }
   0x2   :  { %s2781_s19 = smov 0  }
   0x3 LB: > { %s26_s20 = sadd.s32 1, %s2738_s18  ;;  %p42_p1 = scmp.ne.s32.totalorder %s2730_s16, %s2726_s15  ;;  %s2742_s19 = sphi %s2781_s19, %s14_s19   ;;  %s2738_s18 = sphi %s2779_s18, %s3223_s18   ;;  %s2734_s17 = sphi %s2777_s17, %s3222_s17   ;;  %s2730_s16 = sphi %s2775_s16, %s3221_s16   ;;  %s2726_s15 = sphi %s2773_s15, %s3220_s15  }
   0x4   : > { %p28_p0 = scmp.ge.s32.totalorder %s26_s20, 2  ;;  %p43_p2 = scmp.eq.s32.totalorder %s2742_s19, 0 }
   0x5   : > { %s35_s22 = sadd.s32 1, %s2730_s16  ;;  %p2175_p5 = scmp.ge.s32.totalorder %s2742_s19, 2 }
   0x6   : > { %s3225_s20 = smov (%p28_p0, %s26_s20), 0  ;;  %p44_p3 = por %p43_p2, %p42_p1 }
   0x7   : > { %s30_s21 = ssub.s32 %s2738_s18, %s3225_s20  ;;  %176 = sbr.rel (%p2175_p5) target bundleno = 54 (0x36), region = 24 }
   0x8   : > { %p33_p4 = scmp.eq.s32.totalorder %s30_s21, 0 }
   0xa   : > { %s2808_s23 = scalar_select %p33_p4, %s2730_s16, %s35_s22  }
   0xe   : > { %179 = sbr.rel (!%p44_p3) target bundleno = 54 (0x36), region = 28  ;;  %s181_s24 = sand.u32 (%p44_p3), 1, %s2730_s16  }
   0xf   : > { %s2613_s25 = smul.u32 (%p44_p3), 576, %s2738_s18  ;;  %s2176_s26 = sshll.u32 (%p44_p3), %s181_s24, 9 }
  0x10   : > { %s2818_s30 = scalar_lea.vmem (%p44_p3), [#allocation2], %s2176_s26   ;;  %s2820_s5 = smov (%p44_p3), 0  }
  0x11   : > { %s2816_s29 = scalar_lea.vmem (%p44_p3), %s3215_s0, %s2613_s25  }
  0x15 LB: >> { %v390_v0 = vld [vmem:[%s2816_s29] sm:$0xff]  ;;  %v392_v1 = vld [vmem:[%s2816_s29 + $0x8] sm:$0xff]  ;;  %v394_v2 = vld [vmem:[%s2816_s29 + $0x10] sm:$0xff]  ;;  %s384_s5 = sadd.s32 1, %s2746_s5   ;;  %s2746_s5 = sphi %s2820_s5, %s384_s5  }
  0x16   : >> { %391 = vst [vmem:[%s2818_s30] sm:$0xff] %v390_v0  ;;  %393 = vst [vmem:[%s2818_s30 + $0x8] sm:$0xff] %v392_v1  ;;  %v396_v3 = vld [vmem:[%s2816_s29 + $0x18] sm:$0xff]  ;;  %v398_v4 = vld [vmem:[%s2816_s29 + $0x20] sm:$0xff]  ;;  %p383_p6 = scmp.ge.s32.totalorder %s384_s5, 1 }
  0x17   : >> { %395 = vst [vmem:[%s2818_s30 + $0x10] sm:$0xff] %v394_v2  ;;  %v400_v5 = vld [vmem:[%s2816_s29 + $0x28] sm:$0xff]  ;;  %397 = vst [vmem:[%s2818_s30 + $0x18] sm:$0xff] %v396_v3  ;;  %v402_v6 = vld [vmem:[%s2816_s29 + $0x30] sm:$0xff] }
  0x18   : >> { %399 = vst [vmem:[%s2818_s30 + $0x20] sm:$0xff] %v398_v4  ;;  %401 = vst [vmem:[%s2818_s30 + $0x28] sm:$0xff] %v400_v5  ;;  %v404_v7 = vld [vmem:[%s2816_s29 + $0x38] sm:$0xff]  ;;  %v406_v8 = vld [vmem:[%s2816_s29 + $0x40] sm:$0xff] }
  0x19   : >> { %403 = vst [vmem:[%s2818_s30 + $0x30] sm:$0xff] %v402_v6  ;;  %405 = vst [vmem:[%s2818_s30 + $0x38] sm:$0xff] %v404_v7  ;;  %v408_v9 = vld [vmem:[%s2816_s29 + $0x48] sm:$0xff]  ;;  %v410_v10 = vld [vmem:[%s2816_s29 + $0x50] sm:$0xff] }
  0x1a   : >> { %407 = vst [vmem:[%s2818_s30 + $0x40] sm:$0xff] %v406_v8  ;;  %v412_v11 = vld [vmem:[%s2816_s29 + $0x58] sm:$0xff]  ;;  %409 = vst [vmem:[%s2818_s30 + $0x48] sm:$0xff] %v408_v9  ;;  %v414_v12 = vld [vmem:[%s2816_s29 + $0x60] sm:$0xff] }
  0x1b   : >> { %411 = vst [vmem:[%s2818_s30 + $0x50] sm:$0xff] %v410_v10  ;;  %413 = vst [vmem:[%s2818_s30 + $0x58] sm:$0xff] %v412_v11  ;;  %v416_v13 = vld [vmem:[%s2816_s29 + $0x68] sm:$0xff]  ;;  %v418_v14 = vld [vmem:[%s2816_s29 + $0x70] sm:$0xff] }
  0x1c   : >> { %415 = vst [vmem:[%s2818_s30 + $0x60] sm:$0xff] %v414_v12  ;;  %417 = vst [vmem:[%s2818_s30 + $0x68] sm:$0xff] %v416_v13  ;;  %v420_v15 = vld [vmem:[%s2816_s29 + $0x78] sm:$0xff]  ;;  %v422_v16 = vld [vmem:[%s2816_s29 + $0x80] sm:$0xff] }
  0x1d   : >> { %419 = vst [vmem:[%s2818_s30 + $0x70] sm:$0xff] %v418_v14  ;;  %v424_v17 = vld [vmem:[%s2816_s29 + $0x88] sm:$0xff]  ;;  %421 = vst [vmem:[%s2818_s30 + $0x78] sm:$0xff] %v420_v15  ;;  %v426_v18 = vld [vmem:[%s2816_s29 + $0x90] sm:$0xff] }
  0x1e   : >> { %423 = vst [vmem:[%s2818_s30 + $0x80] sm:$0xff] %v422_v16  ;;  %425 = vst [vmem:[%s2818_s30 + $0x88] sm:$0xff] %v424_v17  ;;  %v428_v19 = vld [vmem:[%s2816_s29 + $0x98] sm:$0xff]  ;;  %v430_v20 = vld [vmem:[%s2816_s29 + $0xa0] sm:$0xff] }
  0x1f   : >> { %427 = vst [vmem:[%s2818_s30 + $0x90] sm:$0xff] %v426_v18  ;;  %429 = vst [vmem:[%s2818_s30 + $0x98] sm:$0xff] %v428_v19  ;;  %v432_v21 = vld [vmem:[%s2816_s29 + $0xa8] sm:$0xff]  ;;  %v434_v22 = vld [vmem:[%s2816_s29 + $0xb0] sm:$0xff] }
  0x20   : >> { %431 = vst [vmem:[%s2818_s30 + $0xa0] sm:$0xff] %v430_v20  ;;  %v436_v23 = vld [vmem:[%s2816_s29 + $0xb8] sm:$0xff]  ;;  %433 = vst [vmem:[%s2818_s30 + $0xa8] sm:$0xff] %v432_v21  ;;  %v438_v24 = vld [vmem:[%s2816_s29 + $0xc0] sm:$0xff] }
  0x21   : >> { %435 = vst [vmem:[%s2818_s30 + $0xb0] sm:$0xff] %v434_v22  ;;  %437 = vst [vmem:[%s2818_s30 + $0xb8] sm:$0xff] %v436_v23  ;;  %v440_v25 = vld [vmem:[%s2816_s29 + $0xc8] sm:$0xff]  ;;  %v442_v26 = vld [vmem:[%s2816_s29 + $0xd0] sm:$0xff] }
  0x22   : >> { %439 = vst [vmem:[%s2818_s30 + $0xc0] sm:$0xff] %v438_v24  ;;  %441 = vst [vmem:[%s2818_s30 + $0xc8] sm:$0xff] %v440_v25  ;;  %v444_v27 = vld [vmem:[%s2816_s29 + $0xd8] sm:$0xff]  ;;  %v446_v28 = vld [vmem:[%s2816_s29 + $0xe0] sm:$0xff] }
  0x23   : >> { %443 = vst [vmem:[%s2818_s30 + $0xd0] sm:$0xff] %v442_v26  ;;  %v448_v29 = vld [vmem:[%s2816_s29 + $0xe8] sm:$0xff]  ;;  %445 = vst [vmem:[%s2818_s30 + $0xd8] sm:$0xff] %v444_v27  ;;  %v450_v30 = vld [vmem:[%s2816_s29 + $0xf0] sm:$0xff] }
  0x24   : >> { %447 = vst [vmem:[%s2818_s30 + $0xe0] sm:$0xff] %v446_v28  ;;  %449 = vst [vmem:[%s2818_s30 + $0xe8] sm:$0xff] %v448_v29  ;;  %v452_v31 = vld [vmem:[%s2816_s29 + $0xf8] sm:$0xff]  ;;  %v454_v32 = vld [vmem:[%s2816_s29 + $0x120] sm:$0xff] }
  0x25   : >> { %451 = vst [vmem:[%s2818_s30 + $0xf0] sm:$0xff] %v450_v30  ;;  %453 = vst [vmem:[%s2818_s30 + $0xf8] sm:$0xff] %v452_v31  ;;  %v456_v33 = vld [vmem:[%s2816_s29 + $0x128] sm:$0xff]  ;;  %v458_v34 = vld [vmem:[%s2816_s29 + $0x130] sm:$0xff] }
  0x26   : >> { %455 = vst [vmem:[%s2818_s30 + $0x100] sm:$0xff] %v454_v32  ;;  %v460_v35 = vld [vmem:[%s2816_s29 + $0x138] sm:$0xff]  ;;  %457 = vst [vmem:[%s2818_s30 + $0x108] sm:$0xff] %v456_v33  ;;  %v462_v36 = vld [vmem:[%s2816_s29 + $0x140] sm:$0xff] }
  0x27   : >> { %459 = vst [vmem:[%s2818_s30 + $0x110] sm:$0xff] %v458_v34  ;;  %461 = vst [vmem:[%s2818_s30 + $0x118] sm:$0xff] %v460_v35  ;;  %v464_v37 = vld [vmem:[%s2816_s29 + $0x148] sm:$0xff]  ;;  %v466_v38 = vld [vmem:[%s2816_s29 + $0x150] sm:$0xff] }
  0x28   : >> { %463 = vst [vmem:[%s2818_s30 + $0x120] sm:$0xff] %v462_v36  ;;  %465 = vst [vmem:[%s2818_s30 + $0x128] sm:$0xff] %v464_v37  ;;  %v468_v39 = vld [vmem:[%s2816_s29 + $0x158] sm:$0xff]  ;;  %v470_v40 = vld [vmem:[%s2816_s29 + $0x160] sm:$0xff] }
  0x29   : >> { %467 = vst [vmem:[%s2818_s30 + $0x130] sm:$0xff] %v466_v38  ;;  %v472_v41 = vld [vmem:[%s2816_s29 + $0x168] sm:$0xff]  ;;  %469 = vst [vmem:[%s2818_s30 + $0x138] sm:$0xff] %v468_v39  ;;  %v474_v42 = vld [vmem:[%s2816_s29 + $0x170] sm:$0xff] }
  0x2a   : >> { %471 = vst [vmem:[%s2818_s30 + $0x140] sm:$0xff] %v470_v40  ;;  %473 = vst [vmem:[%s2818_s30 + $0x148] sm:$0xff] %v472_v41  ;;  %v476_v43 = vld [vmem:[%s2816_s29 + $0x178] sm:$0xff]  ;;  %v478_v44 = vld [vmem:[%s2816_s29 + $0x180] sm:$0xff] }
  0x2b   : >> { %475 = vst [vmem:[%s2818_s30 + $0x150] sm:$0xff] %v474_v42  ;;  %477 = vst [vmem:[%s2818_s30 + $0x158] sm:$0xff] %v476_v43  ;;  %v480_v45 = vld [vmem:[%s2816_s29 + $0x188] sm:$0xff]  ;;  %v482_v46 = vld [vmem:[%s2816_s29 + $0x190] sm:$0xff] }
  0x2c   : >> { %479 = vst [vmem:[%s2818_s30 + $0x160] sm:$0xff] %v478_v44  ;;  %v484_v47 = vld [vmem:[%s2816_s29 + $0x198] sm:$0xff]  ;;  %481 = vst [vmem:[%s2818_s30 + $0x168] sm:$0xff] %v480_v45  ;;  %v486_v48 = vld [vmem:[%s2816_s29 + $0x1a0] sm:$0xff] }
  0x2d   : >> { %483 = vst [vmem:[%s2818_s30 + $0x170] sm:$0xff] %v482_v46  ;;  %485 = vst [vmem:[%s2818_s30 + $0x178] sm:$0xff] %v484_v47  ;;  %v488_v49 = vld [vmem:[%s2816_s29 + $0x1a8] sm:$0xff]  ;;  %v490_v50 = vld [vmem:[%s2816_s29 + $0x1b0] sm:$0xff] }
  0x2e   : >> { %487 = vst [vmem:[%s2818_s30 + $0x180] sm:$0xff] %v486_v48  ;;  %489 = vst [vmem:[%s2818_s30 + $0x188] sm:$0xff] %v488_v49  ;;  %v492_v51 = vld [vmem:[%s2816_s29 + $0x1b8] sm:$0xff]  ;;  %v494_v52 = vld [vmem:[%s2816_s29 + $0x1c0] sm:$0xff] }
  0x2f   : >> { %491 = vst [vmem:[%s2818_s30 + $0x190] sm:$0xff] %v490_v50  ;;  %v496_v53 = vld [vmem:[%s2816_s29 + $0x1c8] sm:$0xff]  ;;  %493 = vst [vmem:[%s2818_s30 + $0x198] sm:$0xff] %v492_v51  ;;  %v498_v54 = vld [vmem:[%s2816_s29 + $0x1d0] sm:$0xff]  ;;  %386 = sbr.rel (!%p383_p6) target bundleno = 21 (0x15), region = 148 }
  0x30   : >> { %495 = vst [vmem:[%s2818_s30 + $0x1a0] sm:$0xff] %v494_v52  ;;  %497 = vst [vmem:[%s2818_s30 + $0x1a8] sm:$0xff] %v496_v53  ;;  %v500_v55 = vld [vmem:[%s2816_s29 + $0x1d8] sm:$0xff]  ;;  %v502_v56 = vld [vmem:[%s2816_s29 + $0x1e0] sm:$0xff] }
  0x31   : >> { %499 = vst [vmem:[%s2818_s30 + $0x1b0] sm:$0xff] %v498_v54  ;;  %501 = vst [vmem:[%s2818_s30 + $0x1b8] sm:$0xff] %v500_v55  ;;  %v504_v57 = vld [vmem:[%s2816_s29 + $0x1e8] sm:$0xff]  ;;  %v506_v58 = vld [vmem:[%s2816_s29 + $0x1f0] sm:$0xff] }
  0x32   : >> { %503 = vst [vmem:[%s2818_s30 + $0x1c0] sm:$0xff] %v502_v56  ;;  %v508_v59 = vld [vmem:[%s2816_s29 + $0x1f8] sm:$0xff]  ;;  %505 = vst [vmem:[%s2818_s30 + $0x1c8] sm:$0xff] %v504_v57  ;;  %v510_v60 = vld [vmem:[%s2816_s29 + $0x200] sm:$0xff] }
  0x33   : >> { %507 = vst [vmem:[%s2818_s30 + $0x1d0] sm:$0xff] %v506_v58  ;;  %509 = vst [vmem:[%s2818_s30 + $0x1d8] sm:$0xff] %v508_v59  ;;  %v512_v61 = vld [vmem:[%s2816_s29 + $0x208] sm:$0xff]  ;;  %v514_v62 = vld [vmem:[%s2816_s29 + $0x210] sm:$0xff] }
  0x34   : >> { %511 = vst [vmem:[%s2818_s30 + $0x1e0] sm:$0xff] %v510_v60  ;;  %513 = vst [vmem:[%s2818_s30 + $0x1e8] sm:$0xff] %v512_v61  ;;  %v516_v63 = vld [vmem:[%s2816_s29 + $0x218] sm:$0xff] }
  0x35   : >> { %515 = vst [vmem:[%s2818_s30 + $0x1f0] sm:$0xff] %v514_v62  ;;  %517 = vst [vmem:[%s2818_s30 + $0x1f8] sm:$0xff] %v516_v63 }
  0x36 PF: > { %p2186_p7 = scmp.ge.s32.totalorder %s2742_s19, 1  ;;  %p572_p8 = scmp.lt.s32.totalorder %s2742_s19, 3 }
  0x38   : > { %p573_p9 = pnand %p2186_p7, %p572_p8 }
  0x39   : > { %v2199_v0 = vld [vmem:[%s3217_s2 + $0x4] sm:$0xf] (!%p573_p9)  ;;  %vm694_vm0 = vcmask (!%p573_p9), 1043456   ;;  %v2964_v1 = vld [vmem:[%s3217_s2 + $0x10] sm:$0xf] (!%p573_p9)  ;;  %s579_s10 = sand.u32 (!%p573_p9), 1, %s2726_s15  }
  0x3a   : > { %576 = sbr.rel (%p573_p9) target bundleno = 350 (0x15e), region = 84  ;;  %2421 = vmatprep.subr.msk.mxu1 (!%p573_p9), %vm694_vm0, %v2199_v0  ;;  %2477 = vmatprep.subr.msk.mxu0 (!%p573_p9), %vm694_vm0, %v2964_v1  ;;  %s2187_s11 = sshll.u32 (!%p573_p9), %s579_s10, 9  ;;  %vm669_vm1 = vcmask (!%p573_p9), 31744   ;;  %v657_v2 = vld [vmem:[%s3217_s2] sm:$0xf] (!%p573_p9) }
  0x3b   : > { %v2272_v3 = vld [vmem:[%s3217_s2 + $0x14] sm:$0xf] (!%p573_p9)  ;;  %2422 = vmatpush3.msk.msra.mxu1 (!%p573_p9), %vm694_vm0, %v2199_v0  ;;  %2478 = vmatpush3.msk.msra.mxu0 (!%p573_p9), %vm694_vm0, %v2964_v1  ;;  %p628_p10 = scmp.lt.s32.totalorder (!%p573_p9), %s2734_s17, 1  ;;  %s2980_s15 = scalar_lea.vmem (!%p573_p9), [#allocation2], %s2187_s11  ;;  %v2289_v10 = vld [vmem:[%s3217_s2 + $0x18] sm:$0xf] (!%p573_p9) }
  0x3c   : > { %v2191_v4 = vld [vmem:[%s2980_s15 + $0x10] sm:$0xff] (!%p573_p9)  ;;  %2435 = vmatprep.subr.msk.mxu1 (!%p573_p9), %vm694_vm0, %v657_v2  ;;  %2491 = vmatprep.subr.msk.mxu0 (!%p573_p9), %vm694_vm0, %v2272_v3  ;;  %v2218_v11 = vld [vmem:[%s3217_s2 + $0x8] sm:$0xf] (!%p573_p9)  ;;  %v2307_v20 = vld [vmem:[%s3217_s2 + $0x1c] sm:$0xf] (!%p573_p9) }
  0x3d   : > { %v2246_v5 = vld [vmem:[%s2980_s15 + $0x110] sm:$0xff] (!%p573_p9)  ;;  %2423 = vmatprep.mubr.msk.f32.mxu1 (!%p573_p9), %vm669_vm1, %v2191_v4  ;;  %v2264_v15 = vld [vmem:[%s2980_s15 + $0x101] sm:$0xff] (!%p573_p9)  ;;  %v2236_v29 = vld [vmem:[%s3217_s2 + $0xc] sm:$0xf] (!%p573_p9) }
  0x3e   : > { %v2987_v6 = vld [vmem:[%s2980_s15 + $0x30] sm:$0xff] (!%p573_p9)  ;;  %2479 = vmatprep.mubr.msk.f32.mxu0 (!%p573_p9), %vm669_vm1, %v2246_v5  ;;  %v2265_v17 = vld [vmem:[%s2980_s15 + $0x121] sm:$0xff] (!%p573_p9) }
  0x3f   : > { %v2247_v7 = vld [vmem:[%s2980_s15 + $0x130] sm:$0xff] (!%p573_p9)  ;;  %2424 = vmatmul.mubr.msk.f32.vlgmr.msra.gmra.mrb[0].mxu1 (!%p573_p9), %vm669_vm1, %v2987_v6  ;;  %v2266_v19 = vld [vmem:[%s2980_s15 + $0x141] sm:$0xff] (!%p573_p9) }
  0x40   : > { %v2993_v8 = vld [vmem:[%s2980_s15 + $0x50] sm:$0xff] (!%p573_p9)  ;;  %2480 = vmatmul.mubr.msk.f32.vlgmr.msra.gmra.mrb[0].mxu0 (!%p573_p9), %vm669_vm1, %v2247_v7  ;;  %2436 = vmatpush3.msk.msra.mxu1 (!%p573_p9), %vm694_vm0, %v657_v2  ;;  %v2267_v22 = vld [vmem:[%s2980_s15 + $0x161] sm:$0xff] (!%p573_p9) }
  0x41   : > { %v2248_v9 = vld [vmem:[%s2980_s15 + $0x150] sm:$0xff]  ;;  %s3227_s17 = smov (!%p628_p10, %s2734_s17), 1  ;;  %2492 = vmatpush3.msk.msra.mxu0 %vm694_vm0, %v2272_v3  ;;  %2426 = vmatprep.mubr.msk.f32.mxu1 %vm669_vm1, %v2993_v8  ;;  %v649_v23 = vld [vmem:[%s2980_s15] sm:$0xff] }
  0x42   : > { %v3011_v12 = vld [vmem:[%s2980_s15 + $0x70] sm:$0xff]  ;;  %2482 = vmatprep.mubr.msk.f32.mxu0 %vm669_vm1, %v2248_v9  ;;  %2505 = vmatprep.subr.msk.mxu0 %vm694_vm0, %v2289_v10  ;;  %v2268_v24 = vld [vmem:[%s2980_s15 + $0x181] sm:$0xff]  ;;  %s2615_s5 = smul.u32 576, %s3227_s17  ;;  %s2339_s12 = sshll.u32 %s3227_s17, 6 }
  0x43   : > { %v2249_v13 = vld [vmem:[%s2980_s15 + $0x170] sm:$0xff]  ;;  %2449 = vmatprep.subr.msk.mxu1 %vm694_vm0, %v2218_v11  ;;  %2427 = vmatmul.mubr.msk.f32.gmra.mrb[2].mxu1 %vm669_vm1, %v3011_v12  ;;  %v650_v25 = vld [vmem:[%s2980_s15 + $0x20] sm:$0xff] }
  0x44   : > { %v3018_v14 = vld [vmem:[%s2980_s15 + $0x90] sm:$0xff]  ;;  %2483 = vmatmul.mubr.msk.f32.gmra.mrb[2].mxu0 %vm669_vm1, %v2249_v13  ;;  %v2269_v26 = vld [vmem:[%s2980_s15 + $0x1a1] sm:$0xff]  ;;  %s2338_s8 = sadd.s32 256, %s2615_s5 }
  0x45   : > { %2429 = vmatprep.mubr.msk.f32.mxu1 %vm669_vm1, %v3018_v14  ;;  %2493 = vmatprep.mubr.msk.f32.mxu0 %vm669_vm1, %v2264_v15  ;;  %v3030_v16 = vld [vmem:[%s2980_s15 + $0xb0] sm:$0xff]  ;;  %v651_v27 = vld [vmem:[%s2980_s15 + $0x40] sm:$0xff]  ;;  %s3102_s11 = scalar_lea.vmem %s3216_s1, %s2338_s8 }
  0x46   : > { %v3034_v18 = vld [vmem:[%s2980_s15 + $0xd0] sm:$0xff]  ;;  %v2270_v28 = vld [vmem:[%s2980_s15 + $0x1c1] sm:$0xff] }
  0x47   : > { %2430 = vmatmul.mubr.msk.f32.gmra.mrb[4].mxu1 %vm669_vm1, %v3030_v16  ;;  %v3047_v21 = vld [vmem:[%s2980_s15 + $0xf0] sm:$0xff]  ;;  %v652_v30 = vld [vmem:[%s2980_s15 + $0x60] sm:$0xff] }
  0x48   : > { %2494 = vmatmul.mubr.msk.f32.vlgmr.msra.gmra.mrb[0].mxu0 %vm669_vm1, %v2265_v17  ;;  %2432 = vmatprep.mubr.msk.f32.mxu1 %vm669_vm1, %v3034_v18  ;;  %v2271_v31 = vld [vmem:[%s2980_s15 + $0x1e1] sm:$0xff]  ;;  %v2299_v50 = vld [vmem:[%s3102_s11 + $0x10] sm:$0xff] }
  0x49   : > { %2506 = vmatpush3.msk.msra.mxu0 %vm694_vm0, %v2289_v10  ;;  %2496 = vmatprep.mubr.msk.f32.mxu0 %vm669_vm1, %v2266_v19  ;;  %v653_v32 = vld [vmem:[%s2980_s15 + $0x80] sm:$0xff]  ;;  %v2250_v55 = vld [vmem:[%s2980_s15 + $0x190] sm:$0xff] }
  0x4a   : > { %2519 = vmatprep.subr.msk.mxu0 %vm694_vm0, %v2307_v20  ;;  %v654_v33 = vld [vmem:[%s2980_s15 + $0xa0] sm:$0xff]  ;;  %v2251_v56 = vld [vmem:[%s2980_s15 + $0x1b0] sm:$0xff] }
  0x4b   : > { %2433 = vmatmul.mubr.msk.f32.gmra.mrb[6].mxu1 %vm669_vm1, %v3047_v21  ;;  %v655_v34 = vld [vmem:[%s2980_s15 + $0xc0] sm:$0xff]  ;;  %v2252_v57 = vld [vmem:[%s2980_s15 + $0x1d0] sm:$0xff] }
  0x4c   : > { %2497 = vmatmul.mubr.msk.f32.gmra.mrb[2].mxu0 %vm669_vm1, %v2267_v22  ;;  %2437 = vmatprep.mubr.msk.f32.mxu1 %vm669_vm1, %v649_v23  ;;  %v2324_v35 = vld [vmem:[%s3217_s2 + $0x20] sm:$0xf]  ;;  %v2253_v58 = vld [vmem:[%s2980_s15 + $0x1f0] sm:$0xff] }
  0x4d   : > { %2499 = vmatprep.mubr.msk.f32.mxu0 %vm669_vm1, %v2268_v24  ;;  %v656_v36 = vld [vmem:[%s2980_s15 + $0xe0] sm:$0xff] }
  0x4e   : > { %v935_v37 = vld [vmem:[%s2980_s15 + $0x1] sm:$0xff] }
  0x4f   : > { %2438 = vmatmul.mubr.msk.f32.vlgmr.msra.gmra.mrb[0].mxu1 %vm669_vm1, %v650_v25  ;;  %v936_v38 = vld [vmem:[%s2980_s15 + $0x21] sm:$0xff] }
  0x50   : > { %2500 = vmatmul.mubr.msk.f32.gmra.mrb[4].mxu0 %vm669_vm1, %v2269_v26  ;;  %2450 = vmatpush3.msk.msra.mxu1 %vm694_vm0, %v2218_v11  ;;  %v937_v39 = vld [vmem:[%s2980_s15 + $0x41] sm:$0xff] }
  0x51   : > { %2440 = vmatprep.mubr.msk.f32.mxu1 %vm669_vm1, %v651_v27  ;;  %2502 = vmatprep.mubr.msk.f32.mxu0 %vm669_vm1, %v2270_v28  ;;  %v938_v40 = vld [vmem:[%s2980_s15 + $0x61] sm:$0xff] }
  0x52   : > { %2463 = vmatprep.subr.msk.mxu1 %vm694_vm0, %v2236_v29  ;;  %v1537_v41 = vld [vmem:[%s3102_s11] sm:$0xff] }
  0x53   : > { %2441 = vmatmul.mubr.msk.f32.gmra.mrb[2].mxu1 %vm669_vm1, %v652_v30  ;;  %v939_v42 = vld [vmem:[%s2980_s15 + $0x81] sm:$0xff] }
  0x54   : > { %2503 = vmatmul.mubr.msk.f32.gmra.mrb[6].mxu0 %vm669_vm1, %v2271_v31  ;;  %2443 = vmatprep.mubr.msk.f32.mxu1 %vm669_vm1, %v653_v32  ;;  %v940_v43 = vld [vmem:[%s2980_s15 + $0xa1] sm:$0xff] }
  0x55   : > { %2507 = vmatprep.mubr.msk.f32.mxu0 %vm669_vm1, %v650_v25  ;;  %v941_v44 = vld [vmem:[%s2980_s15 + $0xc1] sm:$0xff] }
  0x56   : > { %v942_v45 = vld [vmem:[%s2980_s15 + $0xe1] sm:$0xff] }
  0x57   : > { %2444 = vmatmul.mubr.msk.f32.gmra.mrb[4].mxu1 %vm669_vm1, %v654_v33  ;;  %v2228_v46 = vld [vmem:[%s2980_s15 + $0x100] sm:$0xff] }
  0x58   : > { %2508 = vmatmul.mubr.msk.f32.vlgmr.msra.gmra.mrb[0].mxu0 %vm669_vm1, %v651_v27  ;;  %2446 = vmatprep.mubr.msk.f32.mxu1 %vm669_vm1, %v655_v34  ;;  %v2229_v47 = vld [vmem:[%s2980_s15 + $0x120] sm:$0xff] }
  0x59   : > { %2520 = vmatpush3.msk.msra.mxu0 %vm694_vm0, %v2307_v20  ;;  %2510 = vmatprep.mubr.msk.f32.mxu0 %vm669_vm1, %v652_v30  ;;  %v2230_v48 = vld [vmem:[%s2980_s15 + $0x140] sm:$0xff] }
  0x5a   : > { %2533 = vmatprep.subr.msk.mxu0 %vm694_vm0, %v2324_v35  ;;  %v2231_v49 = vld [vmem:[%s2980_s15 + $0x160] sm:$0xff] }
  0x5b   : > { %2447 = vmatmul.mubr.msk.f32.gmra.mrb[6].mxu1 %vm669_vm1, %v656_v36  ;;  %v2232_v51 = vld [vmem:[%s2980_s15 + $0x180] sm:$0xff] }
  0x5c   : > { %2511 = vmatmul.mubr.msk.f32.gmra.mrb[2].mxu0 %vm669_vm1, %v653_v32  ;;  %2451 = vmatprep.mubr.msk.f32.mxu1 %vm669_vm1, %v935_v37  ;;  %v2233_v52 = vld [vmem:[%s2980_s15 + $0x1a0] sm:$0xff] }
  0x5d   : > { %2513 = vmatprep.mubr.msk.f32.mxu0 %vm669_vm1, %v654_v33  ;;  %v2234_v53 = vld [vmem:[%s2980_s15 + $0x1c0] sm:$0xff] }
  0x5e   : > { %v2235_v54 = vld [vmem:[%s2980_s15 + $0x1e0] sm:$0xff]  ;;  %s3182_s15 = scalar_lea.vmem %s3219_s4, %s2339_s12 }
  0x5f   : > { %2452 = vmatmul.mubr.msk.f32.vlgmr.msra.gmra.mrb[0].mxu1 %vm669_vm1, %v936_v38  ;;  %v1840_v59 = vld [vmem:[%s3102_s11 + $0x1] sm:$0xff] }
  0x60   : > { %2514 = vmatmul.mubr.msk.f32.gmra.mrb[4].mxu0 %vm669_vm1, %v655_v34  ;;  %2464 = vmatpush3.msk.msra.mxu1 %vm694_vm0, %v2236_v29 }
  0x61   : > { %2454 = vmatprep.mubr.msk.f32.mxu1 %vm669_vm1, %v937_v39  ;;  %2516 = vmatprep.mubr.msk.f32.mxu0 %vm669_vm1, %v656_v36 }
  0x62   : > { %2547 = vmatprep.subr.msk.mxu1 %vm694_vm0, %v2964_v1 }
  0x63   : > { %2455 = vmatmul.mubr.msk.f32.gmra.mrb[2].mxu1 %vm669_vm1, %v938_v40 }
  0x64   : > { %2517 = vmatmul.mubr.msk.f32.gmra.mrb[6].mxu0 %vm669_vm1, %v1537_v41  ;;  %2457 = vmatprep.mubr.msk.f32.mxu1 %vm669_vm1, %v939_v42 }
  0x65   : > { %2521 = vmatprep.mubr.msk.f32.mxu0 %vm669_vm1, %v2987_v6 }
  0x67   : > { %2458 = vmatmul.mubr.msk.f32.gmra.mrb[4].mxu1 %vm669_vm1, %v940_v43 }
  0x68   : > { %2522 = vmatmul.mubr.msk.f32.vlgmr.msra.gmra.mrb[0].mxu0 %vm669_vm1, %v2993_v8  ;;  %2460 = vmatprep.mubr.msk.f32.mxu1 %vm669_vm1, %v941_v44 }
  0x69   : > { %2534 = vmatpush3.msk.msra.mxu0 %vm694_vm0, %v2324_v35  ;;  %2524 = vmatprep.mubr.msk.f32.mxu0 %vm669_vm1, %v3011_v12 }
  0x6b   : > { %2461 = vmatmul.mubr.msk.f32.gmra.mrb[6].mxu1 %vm669_vm1, %v942_v45 }
  0x6c   : > { %2525 = vmatmul.mubr.msk.f32.gmra.mrb[2].mxu0 %vm669_vm1, %v3018_v14  ;;  %2465 = vmatprep.mubr.msk.f32.mxu1 %vm669_vm1, %v2228_v46 }
  0x6d   : > { %2527 = vmatprep.mubr.msk.f32.mxu0 %vm669_vm1, %v3030_v16 }
  0x6f   : > { %2466 = vmatmul.mubr.msk.f32.vlgmr.msra.gmra.mrb[0].mxu1 %vm669_vm1, %v2229_v47 }
  0x70   : > { %2528 = vmatmul.mubr.msk.f32.gmra.mrb[4].mxu0 %vm669_vm1, %v3034_v18  ;;  %2548 = vmatpush3.msk.msra.mxu1 %vm694_vm0, %v2964_v1  ;;  %v2334_v1 = vld [vmem:[%s3218_s3] ss:$0 sm:$0xff] }
  0x71   : > { %2468 = vmatprep.mubr.msk.f32.mxu1 %vm669_vm1, %v2230_v48  ;;  %2530 = vmatprep.mubr.msk.f32.mxu0 %vm669_vm1, %v3047_v21 }
  0x73   : > { %2469 = vmatmul.mubr.msk.f32.gmra.mrb[2].mxu1 %vm669_vm1, %v2231_v49 }
  0x74   : > { %2531 = vmatmul.mubr.msk.f32.gmra.mrb[6].mxu0 %vm669_vm1, %v2299_v50  ;;  %2471 = vmatprep.mubr.msk.f32.mxu1 %vm669_vm1, %v2232_v51 }
  0x75   : > { %2535 = vmatprep.mubr.msk.f32.mxu0 %vm669_vm1, %v936_v38 }
  0x77   : > { %2472 = vmatmul.mubr.msk.f32.gmra.mrb[4].mxu1 %vm669_vm1, %v2233_v52 }
  0x78   : > { %2536 = vmatmul.mubr.msk.f32.vlgmr.msra.gmra.mrb[0].mxu0 %vm669_vm1, %v937_v39  ;;  %2474 = vmatprep.mubr.msk.f32.mxu1 %vm669_vm1, %v2234_v53 }
  0x79   : > { %2538 = vmatprep.mubr.msk.f32.mxu0 %vm669_vm1, %v938_v40 }
  0x7b   : > { %2475 = vmatmul.mubr.msk.f32.gmra.mrb[6].mxu1 %vm669_vm1, %v2235_v54 }
  0x7c   : > { %2539 = vmatmul.mubr.msk.f32.gmra.mrb[2].mxu0 %vm669_vm1, %v939_v42  ;;  %2485 = vmatprep.mubr.msk.f32.mxu1 %vm669_vm1, %v2250_v55 }
  0x7d   : > { %2541 = vmatprep.mubr.msk.f32.mxu0 %vm669_vm1, %v940_v43 }
  0x7f   : > { %2486 = vmatmul.mubr.msk.f32.vlgmr.msra.gmra.mrb[4].mxu1 %vm669_vm1, %v2251_v56 }
  0x80   : > { %2542 = vmatmul.mubr.msk.f32.gmra.mrb[4].mxu0 %vm669_vm1, %v941_v44  ;;  %2488 = vmatprep.mubr.msk.f32.mxu1 %vm669_vm1, %v2252_v57 }
  0x81   : > { %2544 = vmatprep.mubr.msk.f32.mxu0 %vm669_vm1, %v942_v45 }
  0x83   : > { %2489 = vmatmul.mubr.msk.f32.gmra.mrb[6].mxu1 %vm669_vm1, %v2253_v58 }
  0x84   : > { %2545 = vmatmul.mubr.msk.f32.gmra.mrb[6].mxu0 %vm669_vm1, %v1840_v59 }
 0x142   : > { %v2467_v60 = vpop.f32.mrb[0].mxu1 }
 0x143   : > { %v1189_v61 = vpop.f32.mrb[1].mxu1 }
 0x146   : > { %v2470_v62 = vpop.f32.mrb[2].mxu1 }
 0x147   : > { %v1199_v63 = vpop.f32.mrb[3].mxu1 }
 0x14b   : > { %v2537_v0 = vpop.f32.mrb[0].mxu0 }
 0x14c   : > { %v2549_v2 = vadd.f32 %v2537_v0, %v2467_v60  ;;  %v1943_v3 = vpop.f32.mrb[1].mxu0 }
 0x14d   : > { %v2550_v4 = vadd.f32 %v1943_v3, %v1189_v61 }
 0x14e   : > { %v1998_v5 = vadd.f32 %v2549_v2, %v2334_v1 }
 0x14f   : > { %v1997_v6 = vadd.f32 %v2550_v4, %v2334_v1  ;;  %v2540_v7 = vpop.f32.mrb[2].mxu0 }
 0x150   : > { %2006 = vst.msk [vmem:[%s3182_s15 + $0x8] sm:$0xff] %vm669_vm1, %v1998_v5  ;;  %v2551_v8 = vadd.f32 %v2540_v7, %v2470_v62  ;;  %v1953_v9 = vpop.f32.mrb[3].mxu0 }
 0x151   : > { %2005 = vst.msk [vmem:[%s3182_s15] sm:$0xff] %vm669_vm1, %v1997_v6  ;;  %v2552_v10 = vadd.f32 %v1953_v9, %v1199_v63 }
 0x152   : > { %v2000_v11 = vadd.f32 %v2551_v8, %v2334_v1  ;;  %v2487_v13 = vpop.f32.mrb[4].mxu1 }
 0x153   : > { %v1999_v12 = vadd.f32 %v2552_v10, %v2334_v1  ;;  %v2543_v14 = vpop.f32.mrb[4].mxu0  ;;  %v1360_v16 = vpop.f32.mrb[5].mxu1 }
 0x154   : > { %2008 = vst.msk [vmem:[%s3182_s15 + $0x18] sm:$0xff] %vm669_vm1, %v2000_v11  ;;  %v2553_v15 = vadd.f32 %v2543_v14, %v2487_v13  ;;  %v1963_v17 = vpop.f32.mrb[5].mxu0 }
 0x155   : > { %2007 = vst.msk [vmem:[%s3182_s15 + $0x10] sm:$0xff] %vm669_vm1, %v1999_v12  ;;  %v2554_v18 = vadd.f32 %v1963_v17, %v1360_v16 }
 0x156   : > { %v2002_v19 = vadd.f32 %v2553_v15, %v2334_v1  ;;  %v2490_v21 = vpop.f32.mrb[6].mxu1 }
 0x157   : > { %v2001_v20 = vadd.f32 %v2554_v18, %v2334_v1  ;;  %v2546_v22 = vpop.f32.mrb[6].mxu0  ;;  %v1370_v24 = vpop.f32.mrb[7].mxu1 }
 0x158   : > { %2010 = vst.msk [vmem:[%s3182_s15 + $0x28] sm:$0xff] %vm669_vm1, %v2002_v19  ;;  %v2555_v23 = vadd.f32 %v2546_v22, %v2490_v21  ;;  %v1973_v25 = vpop.f32.mrb[7].mxu0 }
 0x159   : > { %2009 = vst.msk [vmem:[%s3182_s15 + $0x20] sm:$0xff] %vm669_vm1, %v2001_v20  ;;  %v2556_v26 = vadd.f32 %v1973_v25, %v1370_v24 }
 0x15a   : > { %v2004_v27 = vadd.f32 %v2555_v23, %v2334_v1 }
 0x15b   : > { %v2003_v28 = vadd.f32 %v2556_v26, %v2334_v1 }
 0x15c   : > { %2012 = vst.msk [vmem:[%s3182_s15 + $0x38] sm:$0xff] %vm669_vm1, %v2004_v27 }
 0x15d   : > { %2011 = vst.msk [vmem:[%s3182_s15 + $0x30] sm:$0xff] %vm669_vm1, %v2003_v28 }
 0x15e PF: > { %s14_s19 = sadd.s32 1, %s2742_s19   ;;  %s3220_s15 = smov %s2730_s16 }
 0x15f   : > { %p11_p11 = scmp.ge.s32.totalorder %s14_s19, 4   ;;  %s3221_s16 = smov %s2808_s23 }
 0x160   : > { %s3222_s17 = smov %s2738_s18  ;;  %s3223_s18 = smov %s3225_s20 }
 0x161   :  { %13 = sbr.rel (!%p11_p11) target bundleno = 3 (0x3), region = 170 }

</bundles_post_ra>
